<compile_context>
chip_gen: v5e
topology: v5e:2x2
jax: 0.10.0
libtpu: 0.0.40
codegen_flags: <defaults>
</compile_context>

<pallas_src>
import functools

import jax
import jax.numpy as jnp
from jax.experimental import pallas as pl
from jax.experimental.pallas import tpu as pltpu

_SMOOTH = 1e-05


def _round_up(x, m):
    return (x + m - 1) // m * m


def _choose_tile_d(n, d_128, itemsize):
    """Largest multiple-of-128 tile with ~<=2 MiB per input tile, capped at D."""
    target_bytes = 2 * 1024 * 1024
    tile = (target_bytes // max(1, n * itemsize)) // 128 * 128
    tile = max(128, tile)
    return min(tile, d_128)


def _bce_iou_kernel(x_ref, y_ref, o_ref, bce_acc, inter_acc, union_acc,
                    *, d_true, tile_d, needs_mask):
    k = pl.program_id(0)

    @pl.when(k == 0)
    def _init():
        bce_acc[...] = jnp.zeros_like(bce_acc)
        inter_acc[...] = jnp.zeros_like(inter_acc)
        union_acc[...] = jnp.zeros_like(union_acc)

    x = x_ref[...].astype(jnp.float32)
    y = y_ref[...].astype(jnp.float32)
    n = x.shape[0]

    # One transcendental (exp) per element, reused for BCE softplus and sigmoid.
    e = jnp.exp(-jnp.abs(x))
    softplus = jnp.log1p(e)
    # Numerically-stable binary_cross_entropy_with_logits elementwise term.
    bce_elem = jnp.maximum(x, 0.0) - x * y + softplus
    inv = 1.0 / (1.0 + e)
    sig = jnp.where(x >= 0.0, inv, e * inv)   # == sigmoid(x), exp reused

    inter = sig * y
    union = sig + y - inter

    if needs_mask:
        cols = jax.lax.broadcasted_iota(jnp.int32, x.shape, 1) + k * tile_d
        mask = cols < d_true
        zero = jnp.zeros_like(x)
        bce_elem = jnp.where(mask, bce_elem, zero)
        inter = jnp.where(mask, inter, zero)
        union = jnp.where(mask, union, zero)

    # Per-row partial sums, accumulated across D tiles in persistent scratch.
    bce_acc[...] += jnp.sum(bce_elem, axis=1, keepdims=True)
    inter_acc[...] += jnp.sum(inter, axis=1, keepdims=True)
    union_acc[...] += jnp.sum(union, axis=1, keepdims=True)

    @pl.when(k == pl.num_programs(0) - 1)
    def _finalize():
        n_f = jnp.float32(n)
        bce_mean = jnp.sum(bce_acc[...]) / (n_f * jnp.float32(d_true))
        iou = (inter_acc[...] + _SMOOTH) / (union_acc[...] + _SMOOTH)   # (N, 1)
        iou_loss = 1.0 - jnp.sum(iou) / n_f
        o_ref[...] = jnp.reshape(0.5 * bce_mean + iou_loss, (1, 1))


def bce_iou_loss(logits, target):
    """logits, target: (N, C, H, W) arrays. Returns scalar float32 loss."""
    n = logits.shape[0]
    x2d = logits.reshape(n, -1)
    y2d = target.reshape(n, -1)
    d = x2d.shape[1]

    itemsize = max(jnp.dtype(x2d.dtype).itemsize, jnp.dtype(y2d.dtype).itemsize)
    tile_d = _choose_tile_d(n, _round_up(d, 128), itemsize)
    d_pad = _round_up(d, tile_d)
    needs_mask = d_pad != d
    if needs_mask:
        pad = d_pad - d
        x2d = jnp.pad(x2d, ((0, 0), (0, pad)))
        y2d = jnp.pad(y2d, ((0, 0), (0, pad)))

    grid = (d_pad // tile_d,)
    kernel = functools.partial(
        _bce_iou_kernel, d_true=d, tile_d=tile_d, needs_mask=needs_mask)

    cost = pl.CostEstimate(
        flops=10 * n * d,
        transcendentals=2 * n * d,
        bytes_accessed=(x2d.size * x2d.dtype.itemsize
                        + y2d.size * y2d.dtype.itemsize + 4),
    )

    out = pl.pallas_call(
        kernel,
        out_shape=jax.ShapeDtypeStruct((1, 1), jnp.float32),
        grid_spec=pltpu.PrefetchScalarGridSpec(
            num_scalar_prefetch=0,
            grid=grid,
            in_specs=[
                pl.BlockSpec((n, tile_d), lambda k: (0, k)),
                pl.BlockSpec((n, tile_d), lambda k: (0, k)),
            ],
            out_specs=pl.BlockSpec((1, 1), lambda k: (0, 0)),
            scratch_shapes=[
                pltpu.VMEM((n, 1), jnp.float32),   # BCE per-row partial sums
                pltpu.VMEM((n, 1), jnp.float32),   # intersection partial sums
                pltpu.VMEM((n, 1), jnp.float32),   # union partial sums
            ],
        ),
        compiler_params=pltpu.CompilerParams(
            dimension_semantics=("arbitrary",),
        ),
        cost_estimate=cost,
    )(x2d, y2d)
    return out[0, 0]


def _reference_loss(logits, target):
    # Pure-JAX reference mirroring the PyTorch module.
    x = logits.astype(jnp.float32)
    y = target.astype(jnp.float32)
    bce = jnp.mean(jnp.maximum(x, 0.0) - x * y + jnp.log1p(jnp.exp(-jnp.abs(x))))
    smooth = 1e-05
    n = x.shape[0]
    xi = jax.nn.sigmoid(x).reshape(n, -1)
    yi = y.reshape(n, -1)
    inter = xi * yi
    iou = (inter.sum(1, keepdims=True) + smooth) / (
        (xi + yi - inter).sum(1, keepdims=True) + smooth
    )
    iou = 1.0 - iou.sum() / n
    return 0.5 * bce + iou


if __name__ == "__main__":
    key = jax.random.PRNGKey(0)
    k1, k2, k3, k4 = jax.random.split(key, 4)

    # Main test: D = 4*16*16 = 1024 (128-aligned path).
    N, C, H, W = 2, 4, 16, 16
    logits = jax.random.normal(k1, (N, C, H, W), dtype=jnp.float32)
    target = (jax.random.uniform(k2, (N, C, H, W)) > 0.5).astype(jnp.float32)

    loss = bce_iou_loss(logits, target)
    jax.block_until_ready(loss)
    ref = _reference_loss(logits, target)
    assert jnp.allclose(loss, ref, atol=1e-5, rtol=1e-5), (loss, ref)

    # Second test: D = 3*7*5 = 105 (non-128-multiple -> padded + masked path).
    N2, C2, H2, W2 = 2, 3, 7, 5
    logits2 = jax.random.normal(k3, (N2, C2, H2, W2), dtype=jnp.float32)
    target2 = (jax.random.uniform(k4, (N2, C2, H2, W2)) > 0.5).astype(jnp.float32)

    loss2 = bce_iou_loss(logits2, target2)
    jax.block_until_ready(loss2)
    ref2 = _reference_loss(logits2, target2)
    assert jnp.allclose(loss2, ref2, atol=1e-5, rtol=1e-5), (loss2, ref2)

    print("KERNEL_OK")
</pallas_src>

<mosaic_0001>
module attributes {stable_mosaic.version = 11 : i64} {
  func.func @_bce_iou_kernel(%arg0: i32, %arg1: memref<2x1024xf32, #tpu.memory_space<vmem>>, %arg2: memref<2x1024xf32, #tpu.memory_space<vmem>>, %arg3: memref<1x1xf32, #tpu.memory_space<vmem>>, %arg4: memref<2x1xf32, #tpu.memory_space<vmem>>, %arg5: memref<2x1xf32, #tpu.memory_space<vmem>>, %arg6: memref<2x1xf32, #tpu.memory_space<vmem>>) attributes {dimension_semantics = [#tpu.dimension_semantics<arbitrary>], iteration_bounds = array<i64: 1>, scalar_prefetch = 0 : i64, scratch_operands = 3 : i64, tpu.core_type = #tpu.core_type<tc>, window_params = [{transform_indices = @transform_0, window_bounds = array<i64: 2, 1024>}, {transform_indices = @transform_1, window_bounds = array<i64: 2, 1024>}, {pipeline_mode = #tpu.pipeline_mode<synchronous>, transform_indices = @transform_2, window_bounds = array<i64: 1, 1>}]} {
    %c0_i32 = arith.constant 0 : i32
    %0 = arith.cmpi eq, %arg0, %c0_i32 : i32
    %1 = arith.extui %0 : i1 to i32
    %c0_i32_0 = arith.constant 0 : i32
    %2 = arith.cmpi ne, %1, %c0_i32_0 : i32
    scf.if %2 {
      %cst_25 = arith.constant 0.000000e+00 : f32
      %44 = vector.broadcast %cst_25 : f32 to vector<2x1xf32>
      %c0_26 = arith.constant 0 : index
      %c0_27 = arith.constant 0 : index
      %45 = vector.load %arg4[%c0_26, %c0_27] : memref<2x1xf32, #tpu.memory_space<vmem>>, vector<2x1xf32>
      tpu.vector_store %arg4[%c0_26, %c0_27], %44 {strides = array<i32>} : memref<2x1xf32, #tpu.memory_space<vmem>>, vector<2x1xf32>,
      %cst_28 = arith.constant 0.000000e+00 : f32
      %46 = vector.broadcast %cst_28 : f32 to vector<2x1xf32>
      %c0_29 = arith.constant 0 : index
      %c0_30 = arith.constant 0 : index
      %47 = vector.load %arg5[%c0_29, %c0_30] : memref<2x1xf32, #tpu.memory_space<vmem>>, vector<2x1xf32>
      tpu.vector_store %arg5[%c0_29, %c0_30], %46 {strides = array<i32>} : memref<2x1xf32, #tpu.memory_space<vmem>>, vector<2x1xf32>,
      %cst_31 = arith.constant 0.000000e+00 : f32
      %48 = vector.broadcast %cst_31 : f32 to vector<2x1xf32>
      %c0_32 = arith.constant 0 : index
      %c0_33 = arith.constant 0 : index
      %49 = vector.load %arg6[%c0_32, %c0_33] : memref<2x1xf32, #tpu.memory_space<vmem>>, vector<2x1xf32>
      tpu.vector_store %arg6[%c0_32, %c0_33], %48 {strides = array<i32>} : memref<2x1xf32, #tpu.memory_space<vmem>>, vector<2x1xf32>,
    } else {
    }
    %c0 = arith.constant 0 : index
    %c0_1 = arith.constant 0 : index
    %3 = vector.load %arg1[%c0, %c0_1] : memref<2x1024xf32, #tpu.memory_space<vmem>>, vector<2x1024xf32>
    %c0_2 = arith.constant 0 : index
    %c0_3 = arith.constant 0 : index
    %4 = vector.load %arg2[%c0_2, %c0_3] : memref<2x1024xf32, #tpu.memory_space<vmem>>, vector<2x1024xf32>
    %5 = math.absf %3 : vector<2x1024xf32>
    %cst = arith.constant 0.000000e+00 : f32
    %6 = vector.broadcast %cst : f32 to vector<2x1024xf32>
    %7 = arith.subf %6, %5 : vector<2x1024xf32>
    %8 = math.exp %7 : vector<2x1024xf32>
    %9 = math.log1p %8 : vector<2x1024xf32>
    %cst_4 = arith.constant 0.000000e+00 : f32
    %10 = vector.broadcast %cst_4 : f32 to vector<2x1024xf32>
    %11 = arith.maximumf %3, %10 : vector<2x1024xf32>
    %12 = arith.mulf %3, %4 : vector<2x1024xf32>
    %13 = arith.subf %11, %12 : vector<2x1024xf32>
    %14 = arith.addf %13, %9 : vector<2x1024xf32>
    %cst_5 = arith.constant 1.000000e+00 : f32
    %15 = vector.broadcast %cst_5 : f32 to vector<2x1024xf32>
    %16 = arith.addf %15, %8 : vector<2x1024xf32>
    %cst_6 = arith.constant 1.000000e+00 : f32
    %17 = vector.broadcast %cst_6 : f32 to vector<2x1024xf32>
    %18 = arith.divf %17, %16 : vector<2x1024xf32>
    %cst_7 = arith.constant 0.000000e+00 : f32
    %19 = vector.broadcast %cst_7 : f32 to vector<2x1024xf32>
    %20 = arith.cmpf oge, %3, %19 : vector<2x1024xf32>
    %21 = arith.mulf %8, %18 : vector<2x1024xf32>
    %22 = arith.select %20, %18, %21 : vector<2x1024xi1>, vector<2x1024xf32>
    %23 = arith.mulf %22, %4 : vector<2x1024xf32>
    %24 = arith.addf %22, %4 : vector<2x1024xf32>
    %25 = arith.subf %24, %23 : vector<2x1024xf32>
    %c0_8 = arith.constant 0 : index
    %c0_9 = arith.constant 0 : index
    %26 = vector.load %arg4[%c0_8, %c0_9] : memref<2x1xf32, #tpu.memory_space<vmem>>, vector<2x1xf32>
    %cst_10 = arith.constant dense<0.000000e+00> : vector<2xf32>
    %27 = vector.multi_reduction <add>, %14, %cst_10 [1] : vector<2x1024xf32> to vector<2xf32>
    %28 = vector.shape_cast %27 : vector<2xf32> to vector<2x1xf32>
    %29 = arith.addf %26, %28 : vector<2x1xf32>
    %c0_11 = arith.constant 0 : index
    %c0_12 = arith.constant 0 : index
    %30 = vector.load %arg4[%c0_11, %c0_12] : memref<2x1xf32, #tpu.memory_space<vmem>>, vector<2x1xf32>
    tpu.vector_store %arg4[%c0_11, %c0_12], %29 {strides = array<i32>} : memref<2x1xf32, #tpu.memory_space<vmem>>, vector<2x1xf32>,
    %c0_13 = arith.constant 0 : index
    %c0_14 = arith.constant 0 : index
    %31 = vector.load %arg5[%c0_13, %c0_14] : memref<2x1xf32, #tpu.memory_space<vmem>>, vector<2x1xf32>
    %cst_15 = arith.constant dense<0.000000e+00> : vector<2xf32>
    %32 = vector.multi_reduction <add>, %23, %cst_15 [1] : vector<2x1024xf32> to vector<2xf32>
    %33 = vector.shape_cast %32 : vector<2xf32> to vector<2x1xf32>
    %34 = arith.addf %31, %33 : vector<2x1xf32>
    %c0_16 = arith.constant 0 : index
    %c0_17 = arith.constant 0 : index
    %35 = vector.load %arg5[%c0_16, %c0_17] : memref<2x1xf32, #tpu.memory_space<vmem>>, vector<2x1xf32>
    tpu.vector_store %arg5[%c0_16, %c0_17], %34 {strides = array<i32>} : memref<2x1xf32, #tpu.memory_space<vmem>>, vector<2x1xf32>,
    %c0_18 = arith.constant 0 : index
    %c0_19 = arith.constant 0 : index
    %36 = vector.load %arg6[%c0_18, %c0_19] : memref<2x1xf32, #tpu.memory_space<vmem>>, vector<2x1xf32>
    %cst_20 = arith.constant dense<0.000000e+00> : vector<2xf32>
    %37 = vector.multi_reduction <add>, %25, %cst_20 [1] : vector<2x1024xf32> to vector<2xf32>
    %38 = vector.shape_cast %37 : vector<2xf32> to vector<2x1xf32>
    %39 = arith.addf %36, %38 : vector<2x1xf32>
    %c0_21 = arith.constant 0 : index
    %c0_22 = arith.constant 0 : index
    %40 = vector.load %arg6[%c0_21, %c0_22] : memref<2x1xf32, #tpu.memory_space<vmem>>, vector<2x1xf32>
    tpu.vector_store %arg6[%c0_21, %c0_22], %39 {strides = array<i32>} : memref<2x1xf32, #tpu.memory_space<vmem>>, vector<2x1xf32>,
    %c0_i32_23 = arith.constant 0 : i32
    %41 = arith.cmpi eq, %arg0, %c0_i32_23 : i32
    %42 = arith.extui %41 : i1 to i32
    %c0_i32_24 = arith.constant 0 : i32
    %43 = arith.cmpi ne, %42, %c0_i32_24 : i32
    scf.if %43 {
      %c0_25 = arith.constant 0 : index
      %c0_26 = arith.constant 0 : index
      %44 = vector.load %arg4[%c0_25, %c0_26] : memref<2x1xf32, #tpu.memory_space<vmem>>, vector<2x1xf32>
      %45 = vector.shape_cast %44 : vector<2x1xf32> to vector<1x2x1xf32>
      %cst_27 = arith.constant dense<0.000000e+00> : vector<1xf32>
      %46 = vector.multi_reduction <add>, %45, %cst_27 [1, 2] : vector<1x2x1xf32> to vector<1xf32>
      %47 = vector.shape_cast %46 : vector<1xf32> to vector<1x1x1xf32>
      %48 = vector.extract %47[0, 0, 0] : f32 from vector<1x1x1xf32>
      %cst_28 = arith.constant 2.000000e+00 : f32
      %cst_29 = arith.constant 1.024000e+03 : f32
      %49 = arith.mulf %cst_28, %cst_29 : f32
      %50 = arith.divf %48, %49 : f32
      %c0_30 = arith.constant 0 : index
      %c0_31 = arith.constant 0 : index
      %51 = vector.load %arg5[%c0_30, %c0_31] : memref<2x1xf32, #tpu.memory_space<vmem>>, vector<2x1xf32>
      %cst_32 = arith.constant 9.99999974E-6 : f32
      %52 = vector.broadcast %cst_32 : f32 to vector<2x1xf32>
      %53 = arith.addf %51, %52 : vector<2x1xf32>
      %c0_33 = arith.constant 0 : index
      %c0_34 = arith.constant 0 : index
      %54 = vector.load %arg6[%c0_33, %c0_34] : memref<2x1xf32, #tpu.memory_space<vmem>>, vector<2x1xf32>
      %cst_35 = arith.constant 9.99999974E-6 : f32
      %55 = vector.broadcast %cst_35 : f32 to vector<2x1xf32>
      %56 = arith.addf %54, %55 : vector<2x1xf32>
      %57 = arith.divf %53, %56 : vector<2x1xf32>
      %58 = vector.shape_cast %57 : vector<2x1xf32> to vector<1x2x1xf32>
      %cst_36 = arith.constant dense<0.000000e+00> : vector<1xf32>
      %59 = vector.multi_reduction <add>, %58, %cst_36 [1, 2] : vector<1x2x1xf32> to vector<1xf32>
      %60 = vector.shape_cast %59 : vector<1xf32> to vector<1x1x1xf32>
      %61 = vector.extract %60[0, 0, 0] : f32 from vector<1x1x1xf32>
      %cst_37 = arith.constant 2.000000e+00 : f32
      %62 = arith.divf %61, %cst_37 : f32
      %cst_38 = arith.constant 1.000000e+00 : f32
      %63 = arith.subf %cst_38, %62 : f32
      %cst_39 = arith.constant 5.000000e-01 : f32
      %64 = arith.mulf %cst_39, %50 : f32
      %65 = arith.addf %64, %63 : f32
      %66 = vector.broadcast %65 : f32 to vector<1x1xf32>
      %c0_40 = arith.constant 0 : index
      %c0_41 = arith.constant 0 : index
      %67 = vector.load %arg3[%c0_40, %c0_41] : memref<1x1xf32, #tpu.memory_space<vmem>>, vector<1x1xf32>
      tpu.vector_store %arg3[%c0_40, %c0_41], %66 {strides = array<i32>} : memref<1x1xf32, #tpu.memory_space<vmem>>, vector<1x1xf32>,
    } else {
    }
    return
  }
  func.func @transform_0(%arg0: i32) -> (i32, i32) {
    %c0_i32 = arith.constant 0 : i32
    %c0_i32_0 = arith.constant 0 : i32
    return %c0_i32, %arg0 : i32, i32
  }
  func.func @transform_1(%arg0: i32) -> (i32, i32) {
    %c0_i32 = arith.constant 0 : i32
    %c0_i32_0 = arith.constant 0 : i32
    return %c0_i32, %arg0 : i32, i32
  }
  func.func @transform_2(%arg0: i32) -> (i32, i32) {
    %c0_i32 = arith.constant 0 : i32
    %c0_i32_0 = arith.constant 0 : i32
    %c0_i32_1 = arith.constant 0 : i32
    return %c0_i32, %c0_i32_0 : i32, i32
  }
}

</mosaic_0001>

<bundles_post_ra>
// kernel: tpu_custom_call.1
= control target key start
LH: loop header
LB: loop body
LE: loop exit
PB: predicated region body
PF: predicated region fallthrough
CT: control target
= control target key end

     0   :  { %7 = vsyncpa [#allocation6], 0  ;;  %s549_s0 = inlined_call_operand.hbm [shape: f32[2,1024], index: 0, kind: input, shape index: {}]   ;;  %s550_s1 = inlined_call_operand.hbm [shape: f32[2,1024], index: 1, kind: input, shape index: {}]   ;;  %s551_s2 = inlined_call_operand.hbm [shape: f32[1,1], index: 2, kind: output, shape index: {}]  }
   0x1   :  { %8 = vsyncpa [#allocation9], 0 }
   0x2   :  { %9 = vsyncpa [#allocation7], 0  ;;  %s15_s11 = sshll.u32 %s549_s0, 4  ;;  %s450_s12 = smov [#allocation5]   ;;  %s16_s11 = int_to_ptr.hbm [resolvable:$true] %s15_s11 }
   0x3   :  { %s17_s13 = sshll.u32 %s450_s12, 4  ;;  %s26_s16 = sshll.u32 %s550_s1, 4  ;;  %s18_s13 = int_to_ptr.vmem [resolvable:$true] %s17_s13  ;;  %s27_s16 = int_to_ptr.hbm [resolvable:$true] %s26_s16 }
   0x4   :  { %20 = dma.hbm_to_vmem [thread:$0]  %s16_s11, 256, %s18_s13, [#allocation6]  }
   0x5   :  { %s451_s17 = smov [#allocation8]  }
   0x6   :  { %s28_s18 = sshll.u32 %s451_s17, 4  ;;  %s29_s18 = int_to_ptr.vmem [resolvable:$true] %s28_s18 }
   0x7   :  { %31 = dma.hbm_to_vmem [thread:$0]  %s27_s16, 256, %s29_s18, [#allocation9]  }
   0x8   :  { %444 = dma.done.wait [#allocation6], 256  }
   0x9   :  { %445 = vsyncadd [#allocation6], 4294967040 }
   0xa   :  { %446 = dma.done.wait [#allocation9], 256  }
   0xb   :  { %447 = vsyncadd [#allocation9], 4294967040  ;;  %v477_v0 = vld [vmem:[#allocation5] sm:$0xff]  ;;  %v479_v1 = vld [vmem:[#allocation5 + $0x8] sm:$0xff]  ;;  %vm152_vm12 = vcmask 1041408   ;;  %vm44_vm13 = vcmask 1024  }
   0xc   :  { %v52_v2 = vand.u32 2147483647, %v477_v0  ;;  %v53_v3 = vand.u32 2147483647, %v479_v1  ;;  %v489_v12 = vld [vmem:[#allocation8] sm:$0xff]  ;;  %v493_v15 = vld [vmem:[#allocation8 + $0x8] sm:$0xff] }
   0xd   :  { %v78_v17 = vmax.f32 %v477_v0, 0.0  ;;  %v80_v20 = vmul.f32 %v489_v12, %v477_v0  ;;  %v79_v22 = vmax.f32 %v479_v1, 0.0  ;;  %v81_v23 = vmul.f32 %v493_v15, %v479_v1  ;;  %s455_s23 = smov [#allocation10]   ;;  %s329_s27 = sshll.u32 %s551_s2, 4  ;;  %s330_s27 = int_to_ptr.hbm [resolvable:$true] %s329_s27 }
   0xe   :  { %v54_v4 = vsub.f32 0.0, %v52_v2  ;;  %v55_v5 = vsub.f32 0.0, %v53_v3  ;;  %vm118_vm10 = vcmp.ge.f32.partialorder %v477_v0, 0.0  ;;  %vm119_vm11 = vcmp.ge.f32.partialorder %v479_v1, 0.0  ;;  %s327_s24 = sshll.u32 %s455_s23, 4  ;;  %s328_s24 = int_to_ptr.vmem [resolvable:$true] %s327_s24 }
   0xf   :  { %v82_v27 = vsub.f32 %v78_v17, %v80_v20  ;;  %v83_v30 = vsub.f32 %v79_v22, %v81_v23 }
  0x10   :  { %v56_v6 = vmul.f32 1.442695, %v54_v4  ;;  %v58_v7 = vmul.f32 1.442695, %v55_v5 }
  0x12   :  { %354 = vpow2.f32 %v56_v6 }
  0x13   :  { %356 = vpow2.f32 %v58_v7 }
  0x18   :  { %v483_v8 = vpop.eup %354 }
  0x19   :  { %v485_v9 = vpop.eup %356  ;;  %v60_v10 = vadd.f32 1.0, %v483_v8  ;;  %v63_v11 = vmul.f32 -0.5, %v483_v8  ;;  %v66_v18 = vand.u32 2147483647, %v483_v8 }
  0x1a   :  { %v69_v13 = vadd.f32 1.0, %v485_v9  ;;  %v72_v14 = vmul.f32 -0.5, %v485_v9  ;;  %v75_v21 = vand.u32 2147483647, %v485_v9 }
  0x1b   :  { %358 = vlog2.f32 %v60_v10  ;;  %v64_v16 = vadd.f32 1.0, %v63_v11  ;;  %vm67_vm0 = vcmp.lt.f32.partialorder %v66_v18, 0.0004427343  ;;  %vm93_vm2 = vweird.f32 %v60_v10 }
  0x1c   :  { %360 = vlog2.f32 %v69_v13  ;;  %v73_v19 = vadd.f32 1.0, %v72_v14  ;;  %vm76_vm1 = vcmp.lt.f32.partialorder %v75_v21, 0.0004427343  ;;  %v97_v36 = vand.u32 2147483647, %v60_v10 }
  0x1d   :  { %362 = vrcp.f32 %v60_v10  ;;  %v65_v24 = vmul.f32 %v483_v8, %v64_v16  ;;  %v99_v39 = vand.u32 2147483648, %v60_v10  ;;  %v114_v43 = vand.u32 2147483648, %v69_v13 }
  0x1e   :  { %364 = vrcp.f32 %v69_v13  ;;  %v74_v26 = vmul.f32 %v485_v9, %v73_v19  ;;  %vm108_vm4 = vweird.f32 %v69_v13  ;;  %v112_v45 = vand.u32 2147483647, %v69_v13 }
  0x1f   :  { %v100_v47 = vor.u32 1.1754944e-38, %v99_v39  ;;  %vm98_vm7 = vcmp.eq.f32.partialorder %v97_v36, 8.507059e+37  ;;  %v115_v50 = vor.u32 1.1754944e-38, %v114_v43 }
  0x20   :  { %vm113_vm9 = vcmp.eq.f32.partialorder %v112_v45, 8.507059e+37 }
  0x21   :  { %v359_v25 = vpop.eup %358 }
  0x22   :  { %v361_v28 = vpop.eup %360  ;;  %v62_v29 = vmul.f32 0.6931472, %v359_v25 }
  0x23   :  { %v363_v31 = vpop.eup %362  ;;  %v71_v32 = vmul.f32 0.6931472, %v361_v28 }
  0x24   :  { %v365_v33 = vpop.eup %364  ;;  %v68_v34 = vsel %vm67_vm0, %v65_v24, %v62_v29  ;;  %v89_v35 = vmul.f32 %v363_v31, %v60_v10  ;;  %vm94_vm3 = vweird.f32 %v363_v31 }
  0x25   :  { %v77_v37 = vsel %vm76_vm1, %v74_v26, %v71_v32  ;;  %v84_v38 = vadd.f32 %v82_v27, %v68_v34  ;;  %v104_v40 = vmul.f32 %v365_v33, %v69_v13  ;;  %vm109_vm5 = vweird.f32 %v365_v33  ;;  %vm95_vm6 = vmor %vm93_vm2, %vm94_vm3 }
  0x26   :  { %v85_v41 = vadd.f32 %v83_v30, %v77_v37  ;;  %v90_v42 = vsub.f32 1.0, %v89_v35  ;;  %vm110_vm8 = vmor %vm108_vm4, %vm109_vm5  ;;  %vm320_vm4 = vcmask 0  }
  0x27   :  { %v105_v44 = vsub.f32 1.0, %v104_v40  ;;  %133 = vst [vmem:[#allocation1] ss:$4 sm:$0xff] %v84_v38 }
  0x28   :  { %v91_v46 = vmul.f32 %v363_v31, %v90_v42  ;;  %135 = vst [vmem:[#allocation1 + $0x20] ss:$4 sm:$0xff] %v85_v41 }
  0x29   :  { %v106_v48 = vmul.f32 %v365_v33, %v105_v44 }
  0x2a   :  { %v92_v49 = vadd.f32 %v363_v31, %v91_v46 }
  0x2b   :  { %v107_v51 = vadd.f32 %v365_v33, %v106_v48 }
  0x2c   :  { %v96_v52 = vsel %vm95_vm6, %v363_v31, %v92_v49 }
  0x2d   :  { %v101_v53 = vsel %vm98_vm7, %v100_v47, %v96_v52  ;;  %v111_v54 = vsel %vm110_vm8, %v365_v33, %v107_v51  ;;  %v452_v33 = vmov 0.0  }
  0x2e   :  { %v116_v55 = vsel %vm113_vm9, %v115_v50, %v111_v54  ;;  %v120_v56 = vmul.f32 %v483_v8, %v101_v53  ;;  %v136_v57 = vld.sshfl [vmem:[#allocation1] sm:$0xff pattern:$0x73625140]  ;;  %v137_v58 = vld.sshfl [vmem:[#allocation1 + $0x8] sm:$0xff pattern:$0x73625140] }
  0x2f   :  { %v121_v59 = vmul.f32 %v485_v9, %v116_v55  ;;  %v138_v60 = vld.sshfl [vmem:[#allocation1 + $0x10] sm:$0xff pattern:$0x73625140]  ;;  %v139_v61 = vld.sshfl [vmem:[#allocation1 + $0x18] sm:$0xff pattern:$0x73625140] }
  0x30   :  { %v122_v62 = vsel %vm118_vm10, %v101_v53, %v120_v56  ;;  %v140_v63 = vld.sshfl [vmem:[#allocation1 + $0x20] sm:$0xff pattern:$0x73625140]  ;;  %v141_v2 = vld.sshfl [vmem:[#allocation1 + $0x28] sm:$0xff pattern:$0x73625140] }
  0x31   :  { %v123_v3 = vsel %vm119_vm11, %v116_v55, %v121_v59  ;;  %v124_v4 = vmul.f32 %v122_v62, %v489_v12  ;;  %v142_v5 = vld.sshfl [vmem:[#allocation1 + $0x30] sm:$0xff pattern:$0x73625140]  ;;  %v143_v6 = vld.sshfl [vmem:[#allocation1 + $0x38] sm:$0xff pattern:$0x73625140]  ;;  %v126_v1 = vadd.f32 %v122_v62, %v489_v12 }
  0x32   :  { %v125_v0 = vmul.f32 %v123_v3, %v493_v15  ;;  %v127_v7 = vadd.f32 %v123_v3, %v493_v15  ;;  %v153_v8 = vsel %vm152_vm12, %v136_v57, 0.0  ;;  %v154_v9 = vsel %vm152_vm12, %v137_v58, 0.0  ;;  %47 = vst.msk [vmem:[#allocation4] sm:$0x3] %vm44_vm13, %v452_v33 }
  0x33   :  { %176 = vst [vmem:[#allocation1] ss:$4 sm:$0xff] %v124_v4  ;;  %v156_v10 = vsel %vm152_vm12, %v138_v60, 0.0  ;;  %v155_v11 = vadd.f32 %v154_v9, %v153_v8  ;;  %v158_v13 = vsel %vm152_vm12, %v139_v61, 0.0  ;;  %v160_v14 = vsel %vm152_vm12, %v140_v63, 0.0 }
  0x34   :  { %178 = vst [vmem:[#allocation1 + $0x20] ss:$4 sm:$0xff] %v125_v0  ;;  %v128_v16 = vsub.f32 %v126_v1, %v124_v4  ;;  %v129_v19 = vsub.f32 %v127_v7, %v125_v0  ;;  %v162_v26 = vsel %vm152_vm12, %v141_v2, 0.0  ;;  %v164_v28 = vsel %vm152_vm12, %v142_v5, 0.0 }
  0x35   :  { %v157_v21 = vadd.f32 %v156_v10, %v155_v11  ;;  %v166_v32 = vsel %vm152_vm12, %v143_v6, 0.0  ;;  %45 = vst.msk [vmem:[#allocation2] sm:$0x3] %vm44_vm13, %v452_v33 }
  0x36   :  { %46 = vst.msk [vmem:[#allocation3] sm:$0x3] %vm44_vm13, %v452_v33 }
  0x37   :  { %v159_v25 = vadd.f32 %v158_v13, %v157_v21 }
  0x39   :  { %v161_v27 = vadd.f32 %v160_v14, %v159_v25  ;;  %v214_v14 = vld [vmem:[#allocation4] sm:$0x3] }
  0x3a   :  { %v179_v17 = vld.sshfl [vmem:[#allocation1] sm:$0xff pattern:$0x73625140]  ;;  %v180_v18 = vld.sshfl [vmem:[#allocation1 + $0x8] sm:$0xff pattern:$0x73625140] }
  0x3b   :  { %v181_v20 = vld.sshfl [vmem:[#allocation1 + $0x10] sm:$0xff pattern:$0x73625140]  ;;  %v182_v12 = vld.sshfl [vmem:[#allocation1 + $0x18] sm:$0xff pattern:$0x73625140]  ;;  %v163_v29 = vadd.f32 %v162_v26, %v161_v27 }
  0x3c   :  { %v183_v15 = vld.sshfl [vmem:[#allocation1 + $0x20] sm:$0xff pattern:$0x73625140]  ;;  %v184_v22 = vld.sshfl [vmem:[#allocation1 + $0x28] sm:$0xff pattern:$0x73625140] }
  0x3d   :  { %v185_v23 = vld.sshfl [vmem:[#allocation1 + $0x30] sm:$0xff pattern:$0x73625140]  ;;  %v186_v24 = vld.sshfl [vmem:[#allocation1 + $0x38] sm:$0xff pattern:$0x73625140]  ;;  %v165_v34 = vadd.f32 %v164_v28, %v163_v29 }
  0x3e   :  { %217 = vst [vmem:[#allocation1] ss:$4 sm:$0xff] %v128_v16  ;;  %v195_v30 = vsel %vm152_vm12, %v179_v17, 0.0  ;;  %v196_v31 = vsel %vm152_vm12, %v180_v18, 0.0  ;;  %v198_v38 = vsel %vm152_vm12, %v181_v20, 0.0  ;;  %v200_v46 = vsel %vm152_vm12, %v182_v12, 0.0 }
  0x3f   :  { %219 = vst [vmem:[#allocation1 + $0x20] ss:$4 sm:$0xff] %v129_v19  ;;  %v197_v35 = vadd.f32 %v196_v31, %v195_v30  ;;  %v167_v37 = vadd.f32 %v166_v32, %v165_v34  ;;  %v202_v54 = vsel %vm152_vm12, %v183_v15, 0.0  ;;  %v204_v62 = vsel %vm152_vm12, %v184_v22, 0.0  ;;  %v130_v8 = vld [vmem:[#allocation2] sm:$0x3] }
  0x40   :  { %v206_v5 = vsel %vm152_vm12, %v185_v23, 0.0  ;;  %v208_v1 = vsel %vm152_vm12, %v186_v24, 0.0  ;;  %v173_v18 = vld [vmem:[#allocation3] sm:$0x3] }
  0x41   :  { %168 = vadd.xlane.f32.xlu1 %v167_v37  ;;  %v199_v42 = vadd.f32 %v198_v38, %v197_v35  ;;  %v453_v35 = vmov 2048.0  }
  0x43   :  { %v201_v52 = vadd.f32 %v200_v46, %v199_v42 }
  0x45   :  { %v220_v36 = vld.sshfl [vmem:[#allocation1] sm:$0xff pattern:$0x73625140]  ;;  %v221_v39 = vld.sshfl [vmem:[#allocation1 + $0x8] sm:$0xff pattern:$0x73625140]  ;;  %v203_v60 = vadd.f32 %v202_v54, %v201_v52 }
  0x46   :  { %v222_v40 = vld.sshfl [vmem:[#allocation1 + $0x10] sm:$0xff pattern:$0x73625140]  ;;  %v223_v41 = vld.sshfl [vmem:[#allocation1 + $0x18] sm:$0xff pattern:$0x73625140] }
  0x47   :  { %v236_v43 = vsel %vm152_vm12, %v220_v36, 0.0  ;;  %v237_v44 = vsel %vm152_vm12, %v221_v39, 0.0  ;;  %v239_v45 = vsel %vm152_vm12, %v222_v40, 0.0  ;;  %v224_v47 = vld.sshfl [vmem:[#allocation1 + $0x20] sm:$0xff pattern:$0x73625140]  ;;  %v205_v4 = vadd.f32 %v204_v62, %v203_v60 }
  0x48   :  { %v238_v48 = vadd.f32 %v237_v44, %v236_v43  ;;  %v241_v49 = vsel %vm152_vm12, %v223_v41, 0.0  ;;  %v225_v50 = vld.sshfl [vmem:[#allocation1 + $0x28] sm:$0xff pattern:$0x73625140]  ;;  %v243_v53 = vsel %vm152_vm12, %v224_v47, 0.0 }
  0x49   :  { %v226_v55 = vld.sshfl [vmem:[#allocation1 + $0x30] sm:$0xff pattern:$0x73625140]  ;;  %v245_v57 = vsel %vm152_vm12, %v225_v50, 0.0  ;;  %v207_v0 = vadd.f32 %v206_v5, %v205_v4 }
  0x4a   :  { %v240_v51 = vadd.f32 %v239_v45, %v238_v48  ;;  %v227_v58 = vld.sshfl [vmem:[#allocation1 + $0x38] sm:$0xff pattern:$0x73625140]  ;;  %v247_v61 = vsel %vm152_vm12, %v226_v55, 0.0 }
  0x4b   :  { %v249_v2 = vsel %vm152_vm12, %v227_v58, 0.0  ;;  %v209_v7 = vadd.f32 %v208_v1, %v207_v0 }
  0x4c   :  { %v242_v56 = vadd.f32 %v241_v49, %v240_v51  ;;  %v454_v49 = vmov 2.0  }
  0x4e   :  { %v244_v59 = vadd.f32 %v243_v53, %v242_v56 }
  0x50   :  { %v246_v63 = vadd.f32 %v245_v57, %v244_v59 }
  0x52   :  { %v248_v3 = vadd.f32 %v247_v61, %v246_v63 }
  0x54   :  { %v250_v6 = vadd.f32 %v249_v2, %v248_v3 }
  0x56   :  { %251 = vadd.xlane.f32.xlu0 %v250_v6 }
  0x5e   :  { %210 = vadd.xlane.f32.xlu0 %v209_v7 }
  0xb4   :  { %v169_v9 = vpop.xlane.xlu1 %168 }
  0xb5   :  { %v170_v10 = vadd.f32 %v169_v9, %v130_v8 }
  0xb7   :  { %172 = vst.msk [vmem:[#allocation2] sm:$0x3] %vm44_vm13, %v170_v10 }
  0xbe   :  { %v258_v11 = vld [vmem:[#allocation2] sm:$0x3] }
  0xbf   :  { %v259_v13 = vsel %vm44_vm13, %v258_v11, 0.0 }
  0xc0   :  { %260 = vadd.xlane.f32.xlu1 %v259_v13 }
  0xc9   :  { %v252_v16 = vpop.xlane.xlu0 %251 }
  0xca   :  { %v253_v17 = vadd.f32 %v252_v16, %v214_v14 }
  0xcc   :  { %254 = vst.msk [vmem:[#allocation4] sm:$0x3] %vm44_vm13, %v253_v17 }
  0xd1   :  { %v211_v19 = vpop.xlane.xlu0 %210 }
  0xd2   :  { %v212_v20 = vadd.f32 %v211_v19, %v173_v18 }
  0xd3   :  { %v280_v12 = vld [vmem:[#allocation4] sm:$0x3] }
  0xd4   :  { %213 = vst.msk [vmem:[#allocation3] sm:$0x3] %vm44_vm13, %v212_v20  ;;  %v281_v21 = vadd.f32 1e-05, %v280_v12 }
  0xd6   :  { %366 = vrcp.f32 %v281_v21  ;;  %v293_v25 = vand.u32 2147483648, %v281_v21  ;;  %v291_v27 = vand.u32 2147483647, %v281_v21  ;;  %vm287_vm15 = vweird.f32 %v281_v21 }
  0xd7   :  { %368 = vrcp.f32 %v453_v35 }
  0xd8   :  { %v294_v30 = vor.u32 1.1754944e-38, %v293_v25  ;;  %vm292_vm1 = vcmp.eq.f32.partialorder %v291_v27, 8.507059e+37  ;;  %370 = vrcp.f32 %v454_v49 }
  0xdb   :  { %v278_v24 = vld [vmem:[#allocation3] sm:$0x3] }
  0xdc   :  { %v367_v15 = vpop.eup %366  ;;  %v279_v28 = vadd.f32 1e-05, %v278_v24 }
  0xdd   :  { %v283_v22 = vmul.f32 %v367_v15, %v281_v21  ;;  %vm288_vm14 = vweird.f32 %v367_v15  ;;  %v369_v38 = vpop.eup %368 }
  0xde   :  { %vm289_vm0 = vmor %vm287_vm15, %vm288_vm14  ;;  %v270_v40 = vmul.f32 2048.0, %v369_v38  ;;  %vm274_vm2 = vweird.f32 %v369_v38  ;;  %v371_v50 = vpop.eup %370 }
  0xdf   :  { %v284_v23 = vsub.f32 1.0, %v283_v22  ;;  %v308_v51 = vmul.f32 2.0, %v371_v50  ;;  %vm312_vm3 = vweird.f32 %v371_v50 }
  0xe0   :  { %v271_v42 = vsub.f32 1.0, %v270_v40 }
  0xe1   :  { %v285_v26 = vmul.f32 %v367_v15, %v284_v23  ;;  %v309_v52 = vsub.f32 1.0, %v308_v51 }
  0xe2   :  { %v272_v44 = vmul.f32 %v369_v38, %v271_v42 }
  0xe3   :  { %v286_v29 = vadd.f32 %v367_v15, %v285_v26  ;;  %v310_v56 = vmul.f32 %v371_v50, %v309_v52 }
  0xe4   :  { %v273_v46 = vadd.f32 %v369_v38, %v272_v44 }
  0xe5   :  { %v290_v31 = vsel %vm289_vm0, %v367_v15, %v286_v29  ;;  %v311_v59 = vadd.f32 %v371_v50, %v310_v56 }
  0xe6   :  { %v295_v32 = vsel %vm292_vm1, %v294_v30, %v290_v31  ;;  %v275_v48 = vsel %vm274_vm2, %v369_v38, %v273_v46 }
  0xe7   :  { %v296_v33 = vmul.f32 %v295_v32, %v279_v28  ;;  %v313_v62 = vsel %vm312_vm3, %v371_v50, %v311_v59 }
  0xe9   :  { %v297_v34 = vsel %vm44_vm13, %v296_v33, 0.0 }
  0xea   :  { %298 = vadd.xlane.f32.xlu2 %v297_v34 }
 0x133   :  { %v261_v36 = vpop.xlane.xlu1 %260 }
 0x134   :  { %v262_v37 = vrot.slane %v261_v36, 4 }
 0x136   :  { %v263_v39 = vadd.f32 %v262_v37, %v261_v36 }
 0x138   :  { %v264_v41 = vrot.slane %v263_v39, 2 }
 0x13a   :  { %v265_v43 = vadd.f32 %v264_v41, %v263_v39 }
 0x13c   :  { %v266_v45 = vrot.slane %v265_v43, 1 }
 0x13e   :  { %v267_v47 = vadd.f32 %v266_v45, %v265_v43 }
 0x140   :  { %340 = vpush %v267_v47 }
 0x141   :  { %342 = vpush %v275_v48 }
 0x15d   :  { %v299_v53 = vpop.xlane.xlu2 %298 }
 0x15e   :  { %v300_v54 = vrot.slane %v299_v53, 4 }
 0x160   :  { %v301_v55 = vadd.f32 %v300_v54, %v299_v53 }
 0x162   :  { %v302_v57 = vrot.slane %v301_v55, 2 }
 0x164   :  { %v303_v58 = vadd.f32 %v302_v57, %v301_v55 }
 0x166   :  { %v304_v60 = vrot.slane %v303_v58, 1 }
 0x168   :  { %v305_v61 = vadd.f32 %v304_v60, %v303_v58 }
 0x16a   :  { %344 = vpush %v305_v61 }
 0x16b   :  { %346 = vpush %v313_v62 }
 0x171   :  { %s341_s0 = spop %340 }
 0x172   :  { %s343_s1 = spop %342 }
 0x173   :  { %s277_s19 = smul.f32 %s343_s1, %s341_s0 }
 0x175   :  { %s317_s28 = smul.f32 0.5, %s277_s19 }
 0x19b   :  { %s345_s20 = spop %344 }
 0x19c   :  { %s347_s21 = spop %346 }
 0x19d   :  { %s315_s22 = smul.f32 %s347_s21, %s345_s20 }
 0x19f   :  { %s316_s29 = ssub.f32 1.0, %s315_s22 }
 0x1a1   :  { %s318_s30 = sadd.f32 %s317_s28, %s316_s29 }
 0x1a3   :  { %v319_v63 = vstv %s318_s30 }
 0x1a4   :  { %321 = vst.msk [vmem:[#allocation10] sm:$0x1] %vm320_vm4, %v319_v63 }
 0x1a5   :  { %332 = dma.vmem_to_hbm [thread:$0]  %s328_s24, 16, %s330_s27, [#allocation7]  }
 0x1a6   :  { %448 = dma.done.wait [#allocation7], 16  }
 0x1a7   :  { %449 = vsyncadd [#allocation7], 4294967280 }
 0x1a8   :  { %337 = vsyncpa [#allocation6], 1 }
 0x1a9   :  { %338 = vsyncpa [#allocation9], 1 }
 0x1aa   :  { %339 = vsyncpa [#allocation7], 1 }

</bundles_post_ra>
